<compile_context>
chip_gen: v5e
topology: v5e:2x2
jax: 0.10.0
libtpu: 0.0.40
codegen_flags: <defaults>
</compile_context>

<pallas_src>
import math

import jax
import jax.numpy as jnp
from jax.experimental import pallas as pl
from jax.experimental.pallas import tpu as pltpu


# ----------------------------------------------------------------------------
# Tile selection helpers
# ----------------------------------------------------------------------------
def _pick_tile(dim, candidates):
    """Largest candidate that exactly divides `dim`; else the full dim.

    A block dim equal to the full array dim always satisfies the (8,128)
    layout constraint, so the fallback is always legal (just less tiled).
    """
    for c in candidates:
        if dim >= c and dim % c == 0:
            return c
    return dim


_M_TILES = (512, 256, 128, 8)        # sublane axis (multiples of 8)
_N_TILES = (512, 256, 128)           # lane axis; 256-aligned preferred for v6e/v7x MXU
_K_TILES = (512, 256, 128)           # reduction axis
_ROW_TILES = (1024, 512, 256, 128, 8)  # elementwise (HBM-bandwidth-bound) path


# ----------------------------------------------------------------------------
# Pallas kernels
# ----------------------------------------------------------------------------
def _addmm_kernel(x_ref, w_ref, b_ref, o_ref, acc_ref):
    # y = x @ W + bias, accumulated in f32 over the K grid axis.
    k = pl.program_id(2)

    @pl.when(k == 0)
    def _():
        acc_ref[...] = jnp.zeros_like(acc_ref)

    # NOTE: default matmul precision; pass precision=lax.Precision.HIGHEST inside
    # jnp.dot if bit-exact f32 accumulation against a CPU reference is required.
    acc_ref[...] += jnp.dot(x_ref[...], w_ref[...],
                            preferred_element_type=jnp.float32)

    @pl.when(k == pl.num_programs(2) - 1)
    def _():
        o_ref[...] = (acc_ref[...] + b_ref[...].astype(jnp.float32)
                      ).astype(o_ref.dtype)


def _skip_addmm_kernel(gains_ref, x_ref, w_ref, id_ref, b_ref, o_ref, acc_ref):
    # y = x @ (resid_gain*W + skip_gain*Id) + bias, with W_eff formed per-tile in
    # VMEM (VPU work hidden under the MXU) instead of a separate HBM pass.
    k = pl.program_id(2)

    @pl.when(k == 0)
    def _():
        acc_ref[...] = jnp.zeros_like(acc_ref)

    rg = gains_ref[0]
    sg = gains_ref[1]
    w_eff = (rg * w_ref[...].astype(jnp.float32)
             + sg * id_ref[...].astype(jnp.float32)).astype(w_ref.dtype)
    acc_ref[...] += jnp.dot(x_ref[...], w_eff,
                            preferred_element_type=jnp.float32)

    @pl.when(k == pl.num_programs(2) - 1)
    def _():
        o_ref[...] = (acc_ref[...] + b_ref[...].astype(jnp.float32)
                      ).astype(o_ref.dtype)


def _scale_add_bias_kernel(gain_ref, x_ref, b_ref, o_ref):
    # y = bias + x * skip_gain   (special case: resid_gain == 0 and init_type == 'id')
    g = gain_ref[0]
    o_ref[...] = (x_ref[...].astype(jnp.float32) * g
                  + b_ref[...].astype(jnp.float32)).astype(o_ref.dtype)


# ----------------------------------------------------------------------------
# pallas_call wrappers
# ----------------------------------------------------------------------------
def _matmul_grid_spec(M, nx, nf, tm, tn, tk, extra_smem_inputs=0):
    in_specs = []
    if extra_smem_inputs:
        in_specs += [pl.BlockSpec(memory_space=pltpu.MemorySpace.SMEM)] * extra_smem_inputs
    in_specs += [
        pl.BlockSpec((tm, tk), lambda i, j, k: (i, k)),   # x tile
    ]
    return in_specs


def _addmm_pallas(x2d, weight, bias):
    """x2d: (M, nx), weight: (nx, nf), bias: (nf,) -> (M, nf)."""
    M, nx = x2d.shape
    nf = weight.shape[1]
    tm = _pick_tile(M, _M_TILES)
    tn = _pick_tile(nf, _N_TILES)
    tk = _pick_tile(nx, _K_TILES)
    b2d = bias.reshape(1, nf)
    grid = (M // tm, nf // tn, nx // tk)
    itemsize = x2d.dtype.itemsize
    cost = pl.CostEstimate(
        flops=2 * M * nx * nf,
        transcendentals=0,
        bytes_accessed=(M * nx + nx * nf + nf + M * nf) * itemsize)
    return pl.pallas_call(
        _addmm_kernel,
        out_shape=jax.ShapeDtypeStruct((M, nf), x2d.dtype),
        grid_spec=pltpu.PrefetchScalarGridSpec(
            num_scalar_prefetch=0,
            grid=grid,
            in_specs=[
                pl.BlockSpec((tm, tk), lambda i, j, k: (i, k)),
                pl.BlockSpec((tk, tn), lambda i, j, k: (k, j)),
                pl.BlockSpec((1, tn), lambda i, j, k: (0, j)),
            ],
            out_specs=pl.BlockSpec((tm, tn), lambda i, j, k: (i, j)),
            scratch_shapes=[pltpu.VMEM((tm, tn), jnp.float32)],
        ),
        compiler_params=pltpu.CompilerParams(
            dimension_semantics=("parallel", "parallel", "arbitrary")),
        cost_estimate=cost,
    )(x2d, weight, b2d)


def _skip_addmm_pallas(x2d, weight, id_mat, bias, resid_gain, skip_gain):
    """x2d: (M, nx) -> x2d @ (rg*W + sg*Id) + bias, W_eff fused per tile."""
    M, nx = x2d.shape
    nf = weight.shape[1]
    tm = _pick_tile(M, _M_TILES)
    tn = _pick_tile(nf, _N_TILES)
    tk = _pick_tile(nx, _K_TILES)
    b2d = bias.reshape(1, nf)
    gains = jnp.array([resid_gain, skip_gain], dtype=jnp.float32)
    grid = (M // tm, nf // tn, nx // tk)
    itemsize = x2d.dtype.itemsize
    cost = pl.CostEstimate(
        flops=2 * M * nx * nf + 3 * nx * nf,
        transcendentals=0,
        bytes_accessed=(M * nx + 2 * nx * nf + nf + M * nf) * itemsize)
    return pl.pallas_call(
        _skip_addmm_kernel,
        out_shape=jax.ShapeDtypeStruct((M, nf), x2d.dtype),
        grid_spec=pltpu.PrefetchScalarGridSpec(
            num_scalar_prefetch=0,
            grid=grid,
            in_specs=[
                pl.BlockSpec(memory_space=pltpu.MemorySpace.SMEM),    # gains (2,)
                pl.BlockSpec((tm, tk), lambda i, j, k: (i, k)),       # x
                pl.BlockSpec((tk, tn), lambda i, j, k: (k, j)),       # W
                pl.BlockSpec((tk, tn), lambda i, j, k: (k, j)),       # Id
                pl.BlockSpec((1, tn), lambda i, j, k: (0, j)),        # bias
            ],
            out_specs=pl.BlockSpec((tm, tn), lambda i, j, k: (i, j)),
            scratch_shapes=[pltpu.VMEM((tm, tn), jnp.float32)],
        ),
        compiler_params=pltpu.CompilerParams(
            dimension_semantics=("parallel", "parallel", "arbitrary")),
        cost_estimate=cost,
    )(gains, x2d, weight, id_mat, b2d)


def _scale_add_bias_pallas(x2d, skip_gain, bias):
    """x2d: (M, nx) -> bias + x * skip_gain, row-tiled (bandwidth-bound path)."""
    M, nx = x2d.shape
    tm = _pick_tile(M, _ROW_TILES)
    b2d = bias.reshape(1, nx)
    g = jnp.array([skip_gain], dtype=jnp.float32)
    itemsize = x2d.dtype.itemsize
    cost = pl.CostEstimate(
        flops=2 * M * nx,
        transcendentals=0,
        bytes_accessed=(2 * M * nx + nx) * itemsize)
    return pl.pallas_call(
        _scale_add_bias_kernel,
        out_shape=jax.ShapeDtypeStruct((M, nx), x2d.dtype),
        grid_spec=pltpu.PrefetchScalarGridSpec(
            num_scalar_prefetch=0,
            grid=(M // tm,),
            in_specs=[
                pl.BlockSpec(memory_space=pltpu.MemorySpace.SMEM),  # skip_gain (1,)
                pl.BlockSpec((tm, nx), lambda i: (i, 0)),
                pl.BlockSpec((1, nx), lambda i: (0, 0)),
            ],
            out_specs=pl.BlockSpec((tm, nx), lambda i: (i, 0)),
        ),
        compiler_params=pltpu.CompilerParams(
            dimension_semantics=("parallel",)),
        cost_estimate=cost,
    )(g, x2d, b2d)


# ----------------------------------------------------------------------------
# SimplifiedConv1D forward (JAX glue around Pallas kernels)
# ----------------------------------------------------------------------------
def simplified_conv1d_forward(x, params):
    """Mirrors SimplifiedConv1D.forward exactly.

    params: dict with keys
      'weight' (nx, nf), 'bias' (nf,), optional 'skip' bool, 'resid_gain',
      'skip_gain', 'id' (nx, nx), 'init_type'.
    """
    nf = params['weight'].shape[1]
    size_out = x.shape[:-1] + (nf,)
    x2d = x.reshape(-1, x.shape[-1])

    if params.get('skip', False):
        resid_gain = float(params['resid_gain'])
        skip_gain = float(params['skip_gain'])
        if resid_gain == 0.0 and params['init_type'] == 'id':
            y = _scale_add_bias_pallas(x2d, skip_gain, params['bias'])
        else:
            # W_eff = resid_gain*W + skip_gain*Id is formed per-tile inside the
            # kernel (no extra HBM materialization pass).
            y = _skip_addmm_pallas(x2d, params['weight'], params['id'],
                                   params['bias'], resid_gain, skip_gain)
    else:
        y = _addmm_pallas(x2d, params['weight'], params['bias'])

    return y.reshape(size_out)


# ----------------------------------------------------------------------------
# Deterministic parameter construction (mirrors __init__)
# ----------------------------------------------------------------------------
def make_params(key, nf, nx, resid_gain=None, skip_gain=None, init_type='normal',
                bias=True, dtype=jnp.float32):
    params = {}
    params['bias'] = jnp.zeros((nf,), dtype=dtype)
    if skip_gain is None:
        if init_type == 'normal':
            w = 0.02 * jax.random.normal(key, (nx, nf), dtype=dtype)
        elif init_type == 'id':
            assert nx == nf
            w = jnp.eye(nx, dtype=dtype)
        elif init_type == 'orth':
            w = jax.random.orthogonal(key, max(nx, nf), dtype=dtype)[:nx, :nf]
        else:
            raise NotImplementedError
        params['weight'] = w
        params['skip'] = False
    else:
        assert nx == nf
        params['resid_gain'] = float(resid_gain)
        params['skip_gain'] = float(skip_gain)
        params['weight'] = jnp.zeros((nx, nx), dtype=dtype)
        if init_type == 'normal':
            params['id'] = (1.0 / math.sqrt(nx)) * jax.random.normal(
                key, (nx, nx), dtype=dtype)
        elif init_type == 'id':
            params['id'] = jnp.eye(nx, dtype=dtype)
        elif init_type == 'orth':
            params['id'] = jax.random.orthogonal(key, nx, dtype=dtype)
        else:
            raise NotImplementedError
        params['skip'] = True
        params['init_type'] = init_type
    return params


# ----------------------------------------------------------------------------
if __name__ == "__main__":
    key = jax.random.PRNGKey(0)
    k_x, k_w1, k_w2 = jax.random.split(key, 3)

    batch, seq, nx, nf = 2, 8, 32, 32
    x = jax.random.normal(k_x, (batch, seq, nx), dtype=jnp.float32)

    # Case 1: standard linear path (skip_gain=None, normal init)
    p_lin = make_params(k_w1, nf, nx, init_type='normal')
    y_lin = simplified_conv1d_forward(x, p_lin)
    y_lin_ref = (x.reshape(-1, nx) @ p_lin['weight'] + p_lin['bias']).reshape(
        batch, seq, nf)

    # Case 2: skip-reparameterised path (resid_gain=1.0, skip_gain=0.5)
    p_skip = make_params(k_w2, nf, nx, resid_gain=1.0, skip_gain=0.5,
                         init_type='normal')
    y_skip = simplified_conv1d_forward(x, p_skip)
    w_eff = p_skip['resid_gain'] * p_skip['weight'] + p_skip['skip_gain'] * p_skip['id']
    y_skip_ref = (x.reshape(-1, nx) @ w_eff + p_skip['bias']).reshape(batch, seq, nf)

    # Case 3: elementwise special case (resid_gain=0, init_type='id')
    p_id = make_params(k_w2, nf, nx, resid_gain=0.0, skip_gain=2.0, init_type='id')
    y_id = simplified_conv1d_forward(x, p_id)
    y_id_ref = p_id['bias'] + x * 2.0

    jax.block_until_ready((y_lin, y_skip, y_id))

    assert y_lin.shape == (batch, seq, nf)
    assert jnp.allclose(y_lin, y_lin_ref, atol=1e-5, rtol=1e-5)
    assert jnp.allclose(y_skip, y_skip_ref, atol=1e-5, rtol=1e-5)
    assert jnp.allclose(y_id, y_id_ref, atol=1e-5, rtol=1e-5)

    print("KERNEL_OK")
</pallas_src>

<mosaic_0001>
module attributes {stable_mosaic.version = 11 : i64} {
  func.func @_addmm_kernel(%arg0: i32, %arg1: i32, %arg2: i32, %arg3: memref<8x32xf32, #tpu.memory_space<vmem>>, %arg4: memref<32x32xf32, #tpu.memory_space<vmem>>, %arg5: memref<1x32xf32, #tpu.memory_space<vmem>>, %arg6: memref<8x32xf32, #tpu.memory_space<vmem>>, %arg7: memref<8x32xf32, #tpu.memory_space<vmem>>) attributes {dimension_semantics = [#tpu.dimension_semantics<parallel>, #tpu.dimension_semantics<parallel>, #tpu.dimension_semantics<arbitrary>], iteration_bounds = array<i64: 2, 1, 1>, scalar_prefetch = 0 : i64, scratch_operands = 1 : i64, tpu.core_type = #tpu.core_type<tc>, window_params = [{transform_indices = @transform_0, window_bounds = array<i64: 8, 32>}, {transform_indices = @transform_1, window_bounds = array<i64: 32, 32>}, {transform_indices = @transform_2, window_bounds = array<i64: 1, 32>}, {transform_indices = @transform_3, window_bounds = array<i64: 8, 32>}]} {
    %c0_i32 = arith.constant 0 : i32
    %0 = arith.cmpi eq, %arg2, %c0_i32 : i32
    %1 = arith.extui %0 : i1 to i32
    %c0_i32_0 = arith.constant 0 : i32
    %2 = arith.cmpi ne, %1, %c0_i32_0 : i32
    scf.if %2 {
      %cst_10 = arith.constant 0.000000e+00 : f32
      %12 = vector.broadcast %cst_10 : f32 to vector<8x32xf32>
      %c0_11 = arith.constant 0 : index
      %c0_12 = arith.constant 0 : index
      %13 = vector.load %arg7[%c0_11, %c0_12] : memref<8x32xf32, #tpu.memory_space<vmem>>, vector<8x32xf32>
      tpu.vector_store %arg7[%c0_11, %c0_12], %12 {strides = array<i32>} : memref<8x32xf32, #tpu.memory_space<vmem>>, vector<8x32xf32>,
    } else {
    }
    %c0 = arith.constant 0 : index
    %c0_1 = arith.constant 0 : index
    %3 = vector.load %arg7[%c0, %c0_1] : memref<8x32xf32, #tpu.memory_space<vmem>>, vector<8x32xf32>
    %c0_2 = arith.constant 0 : index
    %c0_3 = arith.constant 0 : index
    %4 = vector.load %arg3[%c0_2, %c0_3] : memref<8x32xf32, #tpu.memory_space<vmem>>, vector<8x32xf32>
    %c0_4 = arith.constant 0 : index
    %c0_5 = arith.constant 0 : index
    %5 = vector.load %arg4[%c0_4, %c0_5] : memref<32x32xf32, #tpu.memory_space<vmem>>, vector<32x32xf32>
    %cst = arith.constant dense<0.000000e+00> : vector<8x32xf32>
    %6 = tpu.matmul %4, %5, %cst {dimension_numbers = #tpu.dot_dimension_numbers<[1], [0], [0], [1], [0, 0, 1, 1], [], []>} : vector<8x32xf32>, vector<32x32xf32>, vector<8x32xf32> -> vector<8x32xf32>
    %7 = arith.addf %3, %6 : vector<8x32xf32>
    %c0_6 = arith.constant 0 : index
    %c0_7 = arith.constant 0 : index
    %8 = vector.load %arg7[%c0_6, %c0_7] : memref<8x32xf32, #tpu.memory_space<vmem>>, vector<8x32xf32>
    tpu.vector_store %arg7[%c0_6, %c0_7], %7 {strides = array<i32>} : memref<8x32xf32, #tpu.memory_space<vmem>>, vector<8x32xf32>,
    %c0_i32_8 = arith.constant 0 : i32
    %9 = arith.cmpi eq, %arg2, %c0_i32_8 : i32
    %10 = arith.extui %9 : i1 to i32
    %c0_i32_9 = arith.constant 0 : i32
    %11 = arith.cmpi ne, %10, %c0_i32_9 : i32
    scf.if %11 {
      %c0_10 = arith.constant 0 : index
      %c0_11 = arith.constant 0 : index
      %12 = vector.load %arg7[%c0_10, %c0_11] : memref<8x32xf32, #tpu.memory_space<vmem>>, vector<8x32xf32>
      %c0_12 = arith.constant 0 : index
      %c0_13 = arith.constant 0 : index
      %13 = vector.load %arg5[%c0_12, %c0_13] : memref<1x32xf32, #tpu.memory_space<vmem>>, vector<1x32xf32>
      %14 = vector.broadcast %13 : vector<1x32xf32> to vector<8x32xf32>
      %15 = arith.addf %12, %14 : vector<8x32xf32>
      %c0_14 = arith.constant 0 : index
      %c0_15 = arith.constant 0 : index
      %16 = vector.load %arg6[%c0_14, %c0_15] : memref<8x32xf32, #tpu.memory_space<vmem>>, vector<8x32xf32>
      tpu.vector_store %arg6[%c0_14, %c0_15], %15 {strides = array<i32>} : memref<8x32xf32, #tpu.memory_space<vmem>>, vector<8x32xf32>,
    } else {
    }
    return
  }
  func.func @transform_0(%arg0: i32, %arg1: i32, %arg2: i32) -> (i32, i32) {
    %c0_i32 = arith.constant 0 : i32
    return %arg0, %arg2 : i32, i32
  }
  func.func @transform_1(%arg0: i32, %arg1: i32, %arg2: i32) -> (i32, i32) {
    %c0_i32 = arith.constant 0 : i32
    return %arg2, %arg1 : i32, i32
  }
  func.func @transform_2(%arg0: i32, %arg1: i32, %arg2: i32) -> (i32, i32) {
    %c0_i32 = arith.constant 0 : i32
    %c0_i32_0 = arith.constant 0 : i32
    return %c0_i32, %arg1 : i32, i32
  }
  func.func @transform_3(%arg0: i32, %arg1: i32, %arg2: i32) -> (i32, i32) {
    %c0_i32 = arith.constant 0 : i32
    return %arg0, %arg1 : i32, i32
  }
}

</mosaic_0001>

<bundles_post_ra>
// kernel: tpu_custom_call.1
= control target key start
LH: loop header
LB: loop body
LE: loop exit
PB: predicated region body
PF: predicated region fallthrough
CT: control target
= control target key end

     0   :  { %8 = vsyncpa [#allocation4], 0  ;;  %s845_s0 = inlined_call_operand.hbm [shape: f32[16,32], index: 0, kind: input, shape index: {}]   ;;  %s846_s1 = inlined_call_operand.hbm [shape: f32[32,32], index: 1, kind: input, shape index: {}]   ;;  %s847_s2 = inlined_call_operand.vmem [shape: f32[1,32], index: 2, kind: input, shape index: {}]   ;;  %s848_s3 = inlined_call_operand.hbm [shape: f32[16,32], index: 3, kind: output, shape index: {}]  }
   0x1   :  { %10 = vsyncpa [#allocation4 + $0x1], 0 }
   0x2   :  { %11 = vsyncpa [#allocation7], 0 }
   0x3   :  { %12 = vsyncpa [#allocation5], 0 }
   0x4   :  { %14 = vsyncpa [#allocation5 + $0x1], 0  ;;  %s695_s12 = smov 0   ;;  %s697_s13 = smov 0  }
   0x5   :  { %s699_s14 = smov 0   ;;  %s701_s15 = smov 0  }
   0x6   :  { %s703_s16 = smov 0   ;;  %s705_s17 = smov 0  }
   0x7 LB: > { %s429_s18 = sadd.s32 4294967295, %s669_s17   ;;  %p431_p0 = scmp.ge.s32.totalorder %s669_s17, 1  ;;  %s669_s17 = sphi %s705_s17, %s20_s17   ;;  %s665_s16 = sphi %s703_s16, %s859_s16   ;;  %s661_s15 = sphi %s701_s15, %s858_s15   ;;  %s657_s14 = sphi %s699_s14, %s857_s14   ;;  %s653_s13 = sphi %s697_s13, %s856_s13   ;;  %s649_s12 = sphi %s695_s12, %s855_s12  }
   0x8   : > { %p727_p1 = scmp.eq.s32.totalorder %s429_s18, 0  ;;  %p154_p2 = scmp.lt.s32.totalorder %s669_s17, 3 }
   0x9   : > { %s169_s22 = sshll.u32 %s846_s1, 4  ;;  %s671_s24 = smov [#allocation6]   ;;  %s170_s22 = int_to_ptr.hbm [resolvable:$true] %s169_s22 }
   0xa   : > { %p735_p3 = pnand %p431_p0, %p154_p2  ;;  %s171_s25 = sshll.u32 %s671_s24, 4  ;;  %s172_s25 = int_to_ptr.vmem [resolvable:$true] %s171_s25 }
   0xb   : > { %p434_p6 = scmp.ge.s32.totalorder %s669_s17, 2  ;;  %s672_s26 = smov 128  }
   0xc   : > { %p454_p4 = pneg %p735_p3  ;;  %s673_s27 = smov 8  }
   0xd   : > { %s430_s28 = sadd.s32 4294967294, %s669_s17   ;;  %s39_s29 = sadd.s32 1, %s665_s16 }
   0xe   : > { %p455_p5 = pnand %p454_p4, %p727_p1  ;;  %s48_s30 = sadd.s32 1, %s657_s14 }
   0xf   : > { %p41_p7 = scmp.ge.s32.totalorder %s39_s29, 2  ;;  %p55_p8 = scmp.ne.s32.totalorder %s657_s14, %s653_s13 }
  0x10   : > { %457 = dma.hbm_to_vmem [thread:$0]  (!%p455_p5), %s170_s22, 512, %s172_s25, [#allocation7], %s672_s26, %s672_s26, %s673_s27  }
  0x11   : > { %p56_p9 = scmp.eq.s32.totalorder %s669_s17, 0  ;;  %p61_p10 = scmp.ne.s32.totalorder %s653_s13, %s649_s12 }
  0x12   : > { %s861_s29 = smov (%p41_p7, %s39_s29), 0  ;;  %p141_p13 = scmp.eq.s32.totalorder %s429_s18, 1 }
  0x13   : > { %p754_p11 = por %p56_p9, %p55_p8  ;;  %p760_p12 = por %p727_p1, %p61_p10 }
  0x14   : > { %s43_s6 = ssub.s32 %s665_s16, %s861_s29  ;;  %p147_p2 = scmp.eq.s32.totalorder %s430_s28, 1 }
  0x15   : > { %p46_p0 = scmp.eq.s32.totalorder %s43_s6, 0  ;;  %p766_p4 = por %p141_p13, %p55_p8 }
  0x16   : > { %p467_p5 = scmp.lt.s32.totalorder %s669_s17, 2  ;;  %p774_p7 = por %p147_p2, %p61_p10 }
  0x17   : > { %s772_s8 = scalar_select %p46_p0, %s657_s14, %s48_s30  }
  0x18   : > { %s191_s10 = sand.u32 1, %s657_s14   ;;  %s436_s20 = sshll.u32 %s665_s16, 3 }
  0x19   : > { %s435_s11 = sshll.u32 %s191_s10, 3  ;;  %s200_s18 = scalar_lea.hbm %s845_s0, %s436_s20 }
  0x1a   : > { %s195_s24 = scalar_lea.vmem [#allocation3], %s435_s11  ;;  %s202_s26 = sshll.u32 %s200_s18, 4  ;;  %s203_s26 = int_to_ptr.hbm [resolvable:$true] %s202_s26 }
  0x1b   : > { %s204_s25 = sshll.u32 %s195_s24, 4  ;;  %p459_p8 = pnand %p467_p5, %p754_p11  ;;  %s205_s25 = int_to_ptr.vmem [resolvable:$true] %s204_s25 }
  0x1c   : > { %s192_s27 = scalar_lea.sflag [#allocation4], %s191_s10  ;;  %213 = sbr.rel (%p735_p3) target bundleno = 185 (0xb9), region = 32 }
  0x1d   : > { %461 = dma.hbm_to_vmem [thread:$0]  (!%p459_p8), %s203_s26, 128, %s205_s25, %s192_s27  }
  0x1e   : > { %s788_s28 = sand.u32 (!%p735_p3), 1, %s653_s13  }
  0x1f   : > { %s438_s30 = sshll.u32 (!%p735_p3), %s788_s28, 3  ;;  %s216_s6 = scalar_lea.sflag (!%p735_p3), [#allocation4], %s788_s28 }
  0x20   : > { %s219_s11 = scalar_lea.vmem (!%p735_p3), [#allocation3], %s438_s30 }
  0x21   : > { %636 = dma.done.wait (%p760_p12), %s216_s6, 128  }
  0x22   : > { %638 = vsyncadd (%p760_p12), %s216_s6, 4294967168 }
  0x23   : > { %640 = dma.done.wait (%p727_p1), [#allocation7], 512  }
  0x24   : > { %642 = vsyncadd (%p727_p1), [#allocation7], 4294966784  ;;  %vm259_vm0 = vcmask 261120   ;;  %v674_v0 = vmov 0.0   ;;  %v266_v1 = vld [vmem:[#allocation6 + $0x18] sm:$0xff]  ;;  %v265_v2 = vld [vmem:[#allocation6 + $0x10] sm:$0xff] }
  0x25   : > { %260 = vst.msk [vmem:[#allocation2] sm:$0xff] %vm259_vm0, %v674_v0  ;;  %283 = vmatpush.msra.mxu0 %v266_v1  ;;  %v264_v3 = vld [vmem:[#allocation6 + $0x8] sm:$0xff]  ;;  %v263_v4 = vld [vmem:[#allocation6] sm:$0xff]  ;;  %v262_v5 = vld [vmem:[%s219_s11] sm:$0xff]  ;;  %s443_s19 = sshll.u32 %s661_s15, 3  ;;  %s250_s21 = scalar_lea.vmem [#allocation8], %s438_s30 }
  0x26   : > { %s315_s5 = scalar_lea.hbm %s848_s3, %s443_s19  ;;  %v522_v9 = vld [vmem:[%s847_s2] ss:$0 sm:$0xff]  ;;  %s317_s22 = sshll.u32 %s250_s21, 4  ;;  %s318_s22 = int_to_ptr.vmem [resolvable:$true] %s317_s22 }
  0x27   : > { %284 = vmatpush.msra.mxu0 %v265_v2  ;;  %s319_s18 = sshll.u32 %s315_s5, 4  ;;  %s304_s15 = scalar_lea.sflag [#allocation5], %s788_s28  ;;  %s320_s18 = int_to_ptr.hbm [resolvable:$true] %s319_s18 }
  0x28   : > { %s597_s24 = sshra.s32 %s320_s18, 4  ;;  %s603_s30 = scalar_lea.hbm %s848_s3, 16  ;;  %s598_s24 = int_to_ptr.hbm [resolvable:$true] %s597_s24 }
  0x29   : > { %285 = vmatpush.msra.mxu0 %v264_v3  ;;  %s599_s25 = scalar_lea.hbm %s598_s24, 8  ;;  %p604_p10 = scmp.lt.s32.totalorder %s598_s24, %s848_s3 }
  0x2a   : > { %p600_p1 = scmp.ne.s32.totalorder %s598_s24, %s599_s25  ;;  %p605_p11 = scmp.lt.s32.totalorder %s603_s30, %s599_s25 }
  0x2b   : > { %286 = vmatpush.msra.mxu0 %v263_v4 }
  0x2c   : > { %441 = vmatmul.msk.f32.vlgmr.msra.gmra.mxu0 %vm259_vm0, %v262_v5  ;;  %v261_v6 = vld [vmem:[#allocation2] sm:$0xff]  ;;  %p601_p3 = pnand %p600_p1, %p766_p4  ;;  %p606_p12 = por %p605_p11, %p604_p10 }
  0x2e   : > { %p602_p9 = pneg %p601_p3 }
  0x30   : > { %p607_p13 = pnand %p606_p12, %p602_p9 }
  0xa9   : > { %v288_v7 = vpop.f32.mrf.mxu0 }
  0xaa   : > { %v291_v8 = vadd.f32 %v288_v7, %v261_v6 }
  0xac   : > { %292 = vst.msk [vmem:[#allocation2] sm:$0xff] %vm259_vm0, %v291_v8 }
  0xb3   : > { %v296_v10 = vld [vmem:[#allocation2] sm:$0xff] }
  0xb4   : > { %v301_v11 = vadd.f32 %v522_v9, %v296_v10 }
  0xb6   : > { %302 = vst.msk [vmem:[%s250_s21] sm:$0xff] %vm259_vm0, %v301_v11 }
  0xb7   : > { %610 = shalt.err (!%p607_p13)
}
  0xb8   : > { %452 = dma.vmem_to_hbm [thread:$0]  (%p766_p4), %s318_s22, 128, %s320_s18, %s304_s15  }
  0xb9 PF: > { %s331_s28 = sand.u32 1, %s649_s12   ;;  %p463_p0 = pnand %p434_p6, %p774_p7 }
  0xba   : > { %s332_s19 = scalar_lea.sflag [#allocation5], %s331_s28 }
  0xbb   : > { %p464_p2 = pneg %p463_p0 }
  0xbd   : > { %644 = dma.done.wait (%p464_p2), %s332_s19, 128  }
  0xbe   : > { %646 = vsyncadd (%p464_p2), %s332_s19, 4294967168  ;;  %s20_s17 = sadd.s32 1, %s669_s17   ;;  %s855_s12 = smov %s653_s13 }
  0xbf   : > { %p17_p5 = scmp.ge.s32.totalorder %s20_s17, 4   ;;  %s856_s13 = smov %s657_s14 }
  0xc0   : > { %s857_s14 = smov %s772_s8  ;;  %s858_s15 = smov %s665_s16 }
  0xc1   : > { %s859_s16 = smov %s861_s29  ;;  %19 = sbr.rel (!%p17_p5) target bundleno = 7 (0x7), region = 93 }
  0xc6   :  { %338 = vsyncpa [#allocation4], 1 }
  0xc7   :  { %340 = vsyncpa [#allocation4 + $0x1], 1 }
  0xc8   :  { %341 = vsyncpa [#allocation7], 1 }
  0xc9   :  { %342 = vsyncpa [#allocation5], 1 }
  0xca   :  { %344 = vsyncpa [#allocation5 + $0x1], 1 }

</bundles_post_ra>
